<compile_context>
chip_gen: v6e
topology: v6e:2x2x1
jax: 0.10.0
libtpu: 0.0.40
codegen_flags: <defaults>
</compile_context>

<pallas_src>
import math

import jax
import jax.numpy as jnp
from jax import lax
from jax.experimental import pallas as pl
from jax.experimental.pallas import tpu as pltpu

# Keep XLA-reference matmuls in full f32 so the numerical check is tight.
jax.config.update("jax_default_matmul_precision", "highest")

LN_EPS = 1e-5        # LayerNorm eps (matches the PyTorch module)
MASK_FILL = -1e4     # masked_fill value used on attention scores


# ---------------------------------------------------------------------------
# Kernel 1: embedding gather (scalar-prefetch, data-dependent index_map)
# ---------------------------------------------------------------------------
def embedding_lookup(ids_flat, emb_table, scale):
    """out[i] = emb_table[ids_flat[i]] * scale."""
    n = int(ids_flat.shape[0])
    v, h = emb_table.shape
    emb3 = emb_table.reshape(v, 1, h)  # keep last-two block dims == full dims

    def kernel(ids_ref, emb_ref, o_ref):  # ids_ref lives in SMEM (prefetched)
        del ids_ref
        o_ref[...] = emb_ref[...] * scale

    out = pl.pallas_call(
        kernel,
        out_shape=jax.ShapeDtypeStruct((n, 1, h), emb_table.dtype),
        grid_spec=pltpu.PrefetchScalarGridSpec(
            num_scalar_prefetch=1,
            grid=(n,),
            in_specs=[pl.BlockSpec((1, 1, h), lambda i, ids: (ids[i], 0, 0))],
            out_specs=pl.BlockSpec((1, 1, h), lambda i, ids: (i, 0, 0)),
        ),
        compiler_params=pltpu.CompilerParams(dimension_semantics=("arbitrary",)),
    )(ids_flat.astype(jnp.int32), emb3)
    return out.reshape(n, h)


# ---------------------------------------------------------------------------
# Kernel 2: one fused transformer-encoder layer (per-batch grid step)
# ---------------------------------------------------------------------------
def _layer_norm(x, gamma, beta):
    """LayerNorm over channels (last axis of the time-major (T, C) tile)."""
    mu = jnp.mean(x, axis=-1, keepdims=True)
    xc = x - mu
    var = jnp.mean(xc * xc, axis=-1, keepdims=True)
    return xc * lax.rsqrt(var + LN_EPS) * gamma + beta


def _conv1d_same_stacked(x_tm, w_stacked, bias, k):
    """'same'-padded Conv1d on a time-major (T, C_in) tile.

    w_stacked: (C_out, k*C_in) with tap j in columns [j*C_in, (j+1)*C_in).
    All k taps are fused into a single MXU matmul (feedback: raise contraction dim).
    """
    t, c_in = x_tm.shape
    if k == 1:
        h = lax.dot_general(x_tm, w_stacked, (((1,), (1,)), ((), ())),
                            preferred_element_type=jnp.float32)
        return h + bias
    pad_l, pad_r = (k - 1) // 2, k // 2
    parts = []
    if pad_l:
        parts.append(jnp.zeros((pad_l, c_in), x_tm.dtype))
    parts.append(x_tm)
    if pad_r:
        parts.append(jnp.zeros((pad_r, c_in), x_tm.dtype))
    xp = jnp.concatenate(parts, axis=0)                                # (T+k-1, C_in)
    stacked = jnp.concatenate([xp[j:j + t, :] for j in range(k)], axis=1)  # (T, k*C_in)
    h = lax.dot_general(stacked, w_stacked, (((1,), (1,)), ((), ())),
                        preferred_element_type=jnp.float32)
    return h + bias


def make_encoder_layer_kernel(n_heads, head_dim, ffn_kernel_size):
    inv_sqrt_d = 1.0 / math.sqrt(head_dim)
    ksize = ffn_kernel_size

    def kernel(x_ref, mask_t_ref, mask_row_ref,
               wq_ref, bq_ref, wk_ref, bk_ref, wv_ref, bv_ref, wo_ref, bo_ref,
               relk_ref, relv_ref,
               g1_ref, be1_ref, wf1_ref, bf1_ref, wf2_ref, bf2_ref,
               g2_ref, be2_ref, o_ref):
        x = x_ref[0].astype(jnp.float32)            # (T, C) time-major
        mask_t = mask_t_ref[0].astype(jnp.float32)  # (T, 1) broadcast over channels
        key_valid = mask_row_ref[0] > 0.0           # (1, T) key-column mask
        t, c = x.shape

        # ---- multi-head self-attention (1x1 convs == channel matmuls) ----
        def proj(xin, w_ref2, b_ref2):
            # (T, C_in) x (C_out, C_in)^T -> (T, C_out), f32 MXU accumulation
            return lax.dot_general(xin, w_ref2[...], (((1,), (1,)), ((), ())),
                                   preferred_element_type=jnp.float32) + b_ref2[...]

        q = proj(x, wq_ref, bq_ref)
        k = proj(x, wk_ref, bk_ref)
        v = proj(x, wv_ref, bv_ref)

        relk = relk_ref[...]      # (T, T, Dh): relk[i, j, d]
        relv = relv_ref[...]      # (T, Dh, T): relv[i, d, j]
        wo = wo_ref[...]          # (C, C)

        # Output-projection bias as the accumulator init (feedback: bias folding).
        y = jnp.broadcast_to(bo_ref[...], (t, c)).astype(jnp.float32)
        for h in range(n_heads):
            lo = h * head_dim
            qh = q[:, lo:lo + head_dim] * inv_sqrt_d          # (T, Dh)
            kh = k[:, lo:lo + head_dim]
            vh = v[:, lo:lo + head_dim]
            # content scores s[i, j] = <q_i, k_j>
            s = lax.dot_general(qh, kh, (((1,), (1,)), ((), ())),
                                preferred_element_type=jnp.float32)       # (T, T)
            # relative-position key logits: + sum_d q[i,d] * relk[i,j,d]
            s = s + jnp.sum(qh[:, None, :] * relk, axis=-1)
            # masked_fill(attn_mask == 0, -1e4); masked QUERY rows need no special
            # handling -- they are zeroed by the final sequence mask and their
            # attention weights underflow to exactly 0 for valid queries.
            s = jnp.where(key_valid, s, MASK_FILL)
            # softmax over keys
            m = jnp.max(s, axis=-1, keepdims=True)
            e = jnp.exp(s - m)
            p = e / jnp.sum(e, axis=-1, keepdims=True)
            # attention output for this head
            oh = jnp.dot(p, vh, preferred_element_type=jnp.float32)       # (T, Dh)
            # relative-position value term: + sum_j p[i,j] * relv[i,d,j]
            oh = oh + jnp.sum(p[:, None, :] * relv, axis=-1)
            # fold head h straight into the output projection (no concat/transpose)
            y = y + lax.dot_general(oh, wo[:, lo:lo + head_dim],
                                    (((1,), (1,)), ((), ())),
                                    preferred_element_type=jnp.float32)   # (T, C)

        # TODO(synk): dropout layers omitted (inference path, dropout_ratio = 0).
        # ---- residual + LayerNorm 1 ----
        x = _layer_norm(x + y, g1_ref[...], be1_ref[...])

        # ---- FFN: conv(k) -> relu -> conv(k), masked exactly as in the module ----
        h1 = _conv1d_same_stacked(x * mask_t, wf1_ref[...], bf1_ref[...], ksize)
        h1 = jnp.maximum(h1, 0.0)
        h2 = _conv1d_same_stacked(h1 * mask_t, wf2_ref[...], bf2_ref[...], ksize)
        y2 = h2 * mask_t

        # ---- residual + LayerNorm 2 ----
        o_ref[0] = _layer_norm(x + y2, g2_ref[...], be2_ref[...]).astype(o_ref.dtype)

    return kernel


def _const_spec(arr):
    nd = arr.ndim
    return pl.BlockSpec(arr.shape, lambda i, _n=nd: (0,) * _n)


def encoder_layer_forward(kernel, x, mask_t, mask_row, weights, n_heads, ffn_hidden, ksize):
    b, t, c = x.shape
    head_dim = c // n_heads
    flops = 2 * b * t * (4 * c * c + 4 * n_heads * t * head_dim + 2 * ksize * c * ffn_hidden)
    cost = pl.CostEstimate(
        flops=int(flops),
        transcendentals=int(b * n_heads * t * t),
        bytes_accessed=int(4 * (2 * b * t * c + 4 * c * c + 2 * ksize * c * ffn_hidden
                                + 2 * t * t * head_dim + b * t)),
    )
    in_specs = [pl.BlockSpec((1, t, c), lambda i: (i, 0, 0)),
                pl.BlockSpec((1, t, 1), lambda i: (i, 0, 0)),
                pl.BlockSpec((1, 1, t), lambda i: (i, 0, 0))]
    in_specs += [_const_spec(w) for w in weights]
    return pl.pallas_call(
        kernel,
        out_shape=jax.ShapeDtypeStruct((b, t, c), x.dtype),
        grid_spec=pltpu.PrefetchScalarGridSpec(
            num_scalar_prefetch=0,
            grid=(b,),
            in_specs=in_specs,
            out_specs=pl.BlockSpec((1, t, c), lambda i: (i, 0, 0)),
        ),
        compiler_params=pltpu.CompilerParams(dimension_semantics=("parallel",)),
        cost_estimate=cost,
    )(x, mask_t, mask_row, *weights)


# ---------------------------------------------------------------------------
# Kernel 3: final sequence mask + 1x1 projection conv
# ---------------------------------------------------------------------------
def _proj_kernel(x_ref, mask_t_ref, wp_ref, bp_ref, text_ref, stats_ref):
    x = x_ref[0].astype(jnp.float32)            # (T, C)
    mask_t = mask_t_ref[0].astype(jnp.float32)  # (T, 1)
    xm = x * mask_t                             # encoder's final masking
    text_ref[0] = xm.astype(text_ref.dtype)
    stats = lax.dot_general(xm, wp_ref[...], (((1,), (1,)), ((), ())),
                            preferred_element_type=jnp.float32) + bp_ref[...]
    stats_ref[0] = (stats * mask_t).astype(stats_ref.dtype)


def final_projection(x, mask_t, wp, bp_row):
    b, t, c = x.shape
    p = wp.shape[0]
    return pl.pallas_call(
        _proj_kernel,
        out_shape=(jax.ShapeDtypeStruct((b, t, c), x.dtype),
                   jax.ShapeDtypeStruct((b, t, p), x.dtype)),
        grid_spec=pltpu.PrefetchScalarGridSpec(
            num_scalar_prefetch=0,
            grid=(b,),
            in_specs=[pl.BlockSpec((1, t, c), lambda i: (i, 0, 0)),
                      pl.BlockSpec((1, t, 1), lambda i: (i, 0, 0)),
                      pl.BlockSpec((p, c), lambda i: (0, 0)),
                      pl.BlockSpec((1, p), lambda i: (0, 0))],
            out_specs=(pl.BlockSpec((1, t, c), lambda i: (i, 0, 0)),
                       pl.BlockSpec((1, t, p), lambda i: (i, 0, 0))),
        ),
        compiler_params=pltpu.CompilerParams(dimension_semantics=("parallel",)),
    )(x, mask_t, wp, bp_row)


# ---------------------------------------------------------------------------
# Wrapper glue
# ---------------------------------------------------------------------------
def expand_relative_embeddings(emb_rel_k, emb_rel_v, t, window):
    """(1, 2W+1, Dh) window embeddings -> dense (i, j) tables (param-only glue).

    relk[i, j, d] = relv_src[i, j, d] = emb[j - i + W, d] if |j - i| <= W else 0,
    which is exactly what _get_relative_embeddings + the rel->abs skew produce.
    """
    rel = jnp.arange(t)[None, :] - jnp.arange(t)[:, None]      # rel[i, j] = j - i
    inside = (jnp.abs(rel) <= window)[:, :, None]
    idx = jnp.clip(rel + window, 0, 2 * window)
    relk = jnp.where(inside, emb_rel_k[0][idx], 0.0)           # (T, T, Dh)
    relv = jnp.where(inside, emb_rel_v[0][idx], 0.0)           # (T, T, Dh)
    return relk, jnp.transpose(relv, (0, 2, 1))                # (T,T,Dh), (T,Dh,T)


def text_encoder_forward(params, text_ids, text_lengths, cfg):
    b, t = text_ids.shape
    h = cfg['hidden_channels']
    n_heads = cfg['n_heads']
    head_dim = h // n_heads
    k = cfg['kernel_size']
    window = cfg['window_size']

    mask = (jnp.arange(t)[None, :] < text_lengths[:, None]).astype(jnp.float32)  # (B, T)
    mask_t = mask[:, :, None]        # (B, T, 1): broadcast over channels (time-major)
    mask_row = mask[:, None, :]      # (B, 1, T): key-column mask / returned text_mask

    # 1) embedding * sqrt(H) -> time-major activations (B, T, C)
    x = embedding_lookup(text_ids.reshape(-1), params['emb'], math.sqrt(h))
    x = x.reshape(b, t, h) * mask_t

    # 2) transformer encoder layers (one fused Pallas kernel per layer)
    layer_kernel = make_encoder_layer_kernel(n_heads, head_dim, k)
    for lp in params['layers']:
        relk, relv = expand_relative_embeddings(lp['emb_rel_k'], lp['emb_rel_v'], t, window)
        f = lp['ffn_w1'].shape[0]
        wf1 = jnp.transpose(lp['ffn_w1'], (0, 2, 1)).reshape(f, k * h)   # (F, K*C)
        wf2 = jnp.transpose(lp['ffn_w2'], (0, 2, 1)).reshape(h, k * f)   # (C, K*F)
        weights = (
            lp['wq'], lp['bq'][None, :], lp['wk'], lp['bk'][None, :],
            lp['wv'], lp['bv'][None, :], lp['wo'], lp['bo'][None, :],
            relk, relv,
            lp['ln1_g'][None, :], lp['ln1_b'][None, :],
            wf1, lp['ffn_b1'][None, :], wf2, lp['ffn_b2'][None, :],
            lp['ln2_g'][None, :], lp['ln2_b'][None, :],
        )
        x = encoder_layer_forward(layer_kernel, x, mask_t, mask_row, weights,
                                  n_heads, f, k)

    # 3) final mask + 1x1 projection -> (mean, logs)
    text_tm, stats_tm = final_projection(x, mask_t, params['proj_w'],
                                         params['proj_b'][None, :])

    # back to the module's channel-major (B, C, T) convention (layout glue)
    text = jnp.transpose(text_tm, (0, 2, 1))
    stats = jnp.transpose(stats_tm, (0, 2, 1))
    mean, logs = jnp.split(stats, 2, axis=1)
    return text, mean, logs, mask_row


# ---------------------------------------------------------------------------
# Pure-JAX reference (mirrors the PyTorch forward exactly, incl. the
# pad/reshape relative<->absolute position tricks) for correctness checks.
# ---------------------------------------------------------------------------
def _ref_get_rel_emb(emb, length, window):
    pad_len = max(length - (window + 1), 0)
    start = max(window + 1 - length, 0)
    if pad_len > 0:
        emb = jnp.pad(emb, ((0, 0), (pad_len, pad_len), (0, 0)))
    return emb[:, start:start + 2 * length - 1]


def _ref_rel_to_abs(x):
    b, h, l, _ = x.shape
    x = jnp.pad(x, ((0, 0), (0, 0), (0, 0), (0, 1)))
    xf = x.reshape(b, h, l * 2 * l)
    xf = jnp.pad(xf, ((0, 0), (0, 0), (0, l - 1)))
    return xf.reshape(b, h, l + 1, 2 * l - 1)[:, :, :l, l - 1:]


def _ref_abs_to_rel(x):
    b, h, l, _ = x.shape
    x = jnp.pad(x, ((0, 0), (0, 0), (0, 0), (0, l - 1)))
    xf = x.reshape(b, h, l * l + l * (l - 1))
    xf = jnp.pad(xf, ((0, 0), (0, 0), (l, 0)))
    return xf.reshape(b, h, l, 2 * l)[:, :, :, 1:]


def _ref_mha(x, lp, attn_mask, n_heads, head_dim, window):
    bsz, c, t = x.shape

    def conv1x1(inp, w, bias):
        return jnp.einsum('oc,bct->bot', w, inp) + bias[None, :, None]

    q = conv1x1(x, lp['wq'], lp['bq'])
    k = conv1x1(x, lp['wk'], lp['bk'])
    v = conv1x1(x, lp['wv'], lp['bv'])

    def heads(z):
        return z.reshape(bsz, n_heads, head_dim, t).transpose(0, 1, 3, 2)

    qh, kh, vh = heads(q), heads(k), heads(v)
    qs = qh / math.sqrt(head_dim)
    scores = jnp.einsum('bhtd,bhsd->bhts', qs, kh)
    rel_k = _ref_get_rel_emb(lp['emb_rel_k'], t, window)
    rel_logits = jnp.einsum('bhtd,gmd->bhtm', qs, rel_k)
    scores = scores + _ref_rel_to_abs(rel_logits)
    scores = jnp.where(attn_mask == 0, MASK_FILL, scores)
    p = jax.nn.softmax(scores, axis=-1)
    out = jnp.einsum('bhts,bhsd->bhtd', p, vh)
    rel_w = _ref_abs_to_rel(p)
    rel_v = _ref_get_rel_emb(lp['emb_rel_v'], t, window)
    out = out + jnp.einsum('bhtm,gmd->bhtd', rel_w, rel_v)
    out = out.transpose(0, 1, 3, 2).reshape(bsz, c, t)
    return jnp.einsum('oc,bct->bot', lp['wo'], out) + lp['bo'][None, :, None]


def _ref_layer_norm(x, gamma, beta):
    mu = jnp.mean(x, axis=1, keepdims=True)
    var = jnp.mean((x - mu) ** 2, axis=1, keepdims=True)
    return (x - mu) / jnp.sqrt(var + LN_EPS) * gamma[None, :, None] + beta[None, :, None]


def _ref_ffn(x, mask3, lp, k):
    pad_l, pad_r = (k - 1) // 2, k // 2

    def conv(inp, w, bias):
        y = lax.conv_general_dilated(inp, w, (1,), [(pad_l, pad_r)],
                                     dimension_numbers=('NCH', 'OIH', 'NCH'))
        return y + bias[None, :, None]

    hdn = conv(x * mask3, lp['ffn_w1'], lp['ffn_b1'])
    hdn = jnp.maximum(hdn, 0.0)
    out = conv(hdn * mask3, lp['ffn_w2'], lp['ffn_b2'])
    return out * mask3


def text_encoder_ref(params, text_ids, text_lengths, cfg):
    b, t = text_ids.shape
    h = cfg['hidden_channels']
    n_heads = cfg['n_heads']
    head_dim = h // n_heads
    k = cfg['kernel_size']
    window = cfg['window_size']

    mask3 = (jnp.arange(t)[None, :] < text_lengths[:, None]).astype(jnp.float32)[:, None, :]
    attn_mask = mask3[:, :, None, :] * mask3[:, :, :, None]     # (B, 1, T, T)

    x = params['emb'][text_ids] * math.sqrt(h)                  # (B, T, H)
    x = jnp.transpose(x, (0, 2, 1)) * mask3                     # (B, H, T)

    for lp in params['layers']:
        y = _ref_mha(x, lp, attn_mask, n_heads, head_dim, window)
        x = _ref_layer_norm(x + y, lp['ln1_g'], lp['ln1_b'])
        y = _ref_ffn(x, mask3, lp, k)
        x = _ref_layer_norm(x + y, lp['ln2_g'], lp['ln2_b'])

    x = x * mask3
    stats = jnp.einsum('oc,bct->bot', params['proj_w'], x) + params['proj_b'][None, :, None]
    stats = stats * mask3
    mean, logs = jnp.split(stats, 2, axis=1)
    return x, mean, logs, mask3


# ---------------------------------------------------------------------------
if __name__ == "__main__":
    cfg = dict(n_vocab=37, out_channels=4, hidden_channels=32, filter_channels=64,
               n_heads=2, n_layers=2, kernel_size=3, dropout_ratio=0.0, window_size=4)
    B, T = 2, 16
    H = cfg['hidden_channels']
    F = cfg['filter_channels']
    K = cfg['kernel_size']
    O = cfg['out_channels']
    Dh = H // cfg['n_heads']
    W = cfg['window_size']

    key = jax.random.PRNGKey(0)

    def nrm(k_, shape, scale):
        return (scale * jax.random.normal(k_, shape)).astype(jnp.float32)

    key, k_emb, k_ids, k_pw, k_pb = jax.random.split(key, 5)
    params = {
        'emb': nrm(k_emb, (cfg['n_vocab'], H), H ** -0.5),
        'proj_w': nrm(k_pw, (2 * O, H), 0.2),
        'proj_b': nrm(k_pb, (2 * O,), 0.1),
        'layers': [],
    }
    for _ in range(cfg['n_layers']):
        key, *ks = jax.random.split(key, 19)
        ks = iter(ks)
        params['layers'].append({
            'wq': nrm(next(ks), (H, H), 0.2), 'bq': nrm(next(ks), (H,), 0.1),
            'wk': nrm(next(ks), (H, H), 0.2), 'bk': nrm(next(ks), (H,), 0.1),
            'wv': nrm(next(ks), (H, H), 0.2), 'bv': nrm(next(ks), (H,), 0.1),
            'wo': nrm(next(ks), (H, H), 0.2), 'bo': nrm(next(ks), (H,), 0.1),
            'emb_rel_k': nrm(next(ks), (1, 2 * W + 1, Dh), Dh ** -0.5),
            'emb_rel_v': nrm(next(ks), (1, 2 * W + 1, Dh), Dh ** -0.5),
            'ln1_g': 1.0 + nrm(next(ks), (H,), 0.05),
            'ln1_b': nrm(next(ks), (H,), 0.05),
            'ffn_w1': nrm(next(ks), (F, H, K), 0.15),
            'ffn_b1': nrm(next(ks), (F,), 0.1),
            'ffn_w2': nrm(next(ks), (H, F, K), 0.15),
            'ffn_b2': nrm(next(ks), (H,), 0.1),
            'ln2_g': 1.0 + nrm(next(ks), (H,), 0.05),
            'ln2_b': nrm(next(ks), (H,), 0.05),
        })

    text_ids = jax.random.randint(k_ids, (B, T), 0, cfg['n_vocab'], dtype=jnp.int32)
    text_lengths = jnp.array([T, 11], dtype=jnp.int32)

    outs = text_encoder_forward(params, text_ids, text_lengths, cfg)
    outs = jax.block_until_ready(outs)
    text, mean, logs, text_mask = outs

    r_text, r_mean, r_logs, r_mask = text_encoder_ref(params, text_ids, text_lengths, cfg)

    assert text.shape == (B, H, T)
    assert mean.shape == (B, O, T) and logs.shape == (B, O, T)
    assert text_mask.shape == (B, 1, T)
    for got, ref, name in ((text, r_text, "text"), (mean, r_mean, "mean"),
                           (logs, r_logs, "logs"), (text_mask, r_mask, "mask")):
        assert jnp.allclose(got, ref, atol=5e-4, rtol=5e-4), f"mismatch vs reference: {name}"

    print("KERNEL_OK")
</pallas_src>

<mosaic_0001>
module attributes {stable_mosaic.version = 11 : i64} {
  func.func @kernel(%arg0: i32, %arg1: memref<32xi32, #tpu.memory_space<smem>>, %arg2: memref<1x1x32xf32, #tpu.memory_space<vmem>>, %arg3: memref<1x1x32xf32, #tpu.memory_space<vmem>>) attributes {dimension_semantics = [#tpu.dimension_semantics<arbitrary>], iteration_bounds = array<i64: 32>, scalar_prefetch = 1 : i64, scratch_operands = 0 : i64, tpu.core_type = #tpu.core_type<tc>, window_params = [{transform_indices = @transform_0, window_bounds = array<i64: 1, 1, 32>}, {transform_indices = @transform_1, window_bounds = array<i64: 1, 1, 32>}]} {
    %c0 = arith.constant 0 : index
    %c0_0 = arith.constant 0 : index
    %c0_1 = arith.constant 0 : index
    %0 = vector.load %arg2[%c0, %c0_0, %c0_1] : memref<1x1x32xf32, #tpu.memory_space<vmem>>, vector<1x1x32xf32>
    %cst = arith.constant 5.65685415 : f32
    %1 = vector.broadcast %cst : f32 to vector<1x1x32xf32>
    %2 = arith.mulf %0, %1 : vector<1x1x32xf32>
    %c0_2 = arith.constant 0 : index
    %c0_3 = arith.constant 0 : index
    %c0_4 = arith.constant 0 : index
    %3 = vector.load %arg3[%c0_2, %c0_3, %c0_4] : memref<1x1x32xf32, #tpu.memory_space<vmem>>, vector<1x1x32xf32>
    tpu.vector_store %arg3[%c0_2, %c0_3, %c0_4], %2 {strides = array<i32>} : memref<1x1x32xf32, #tpu.memory_space<vmem>>, vector<1x1x32xf32>,
    return
  }
  func.func @transform_0(%arg0: i32, %arg1: memref<32xi32, #tpu.memory_space<smem>>) -> (i32, i32, i32) {
    %0 = arith.index_cast %arg0 : i32 to index
    %1 = memref.load %arg1[%0] : memref<32xi32, #tpu.memory_space<smem>>
    %c0_i32 = arith.constant 0 : i32
    %c0_i32_0 = arith.constant 0 : i32
    %c0_i32_1 = arith.constant 0 : i32
    return %1, %c0_i32, %c0_i32_0 : i32, i32, i32
  }
  func.func @transform_1(%arg0: i32, %arg1: memref<32xi32, #tpu.memory_space<smem>>) -> (i32, i32, i32) {
    %c0_i32 = arith.constant 0 : i32
    %c0_i32_0 = arith.constant 0 : i32
    %c0_i32_1 = arith.constant 0 : i32
    return %arg0, %c0_i32, %c0_i32_0 : i32, i32, i32
  }
}

</mosaic_0001>

<bundles_post_ra>
// kernel: tpu_custom_call.1
= control target key start
LH: loop header
LB: loop body
LE: loop exit
PB: predicated region body
PF: predicated region fallthrough
CT: control target
= control target key end

     0   :  { %s420_s0 = inlined_call_operand.vmem [shape: s32[32], index: 0, kind: input, shape index: {}]   ;;  %s421_s1 = inlined_call_operand.vmem [shape: f32[37,1,32], index: 1, kind: input, shape index: {}]   ;;  %s422_s2 = inlined_call_operand.hbm [shape: f32[32,1,32], index: 2, kind: output, shape index: {}]  }
   0x1   :  { %s7_s11 = sshll.u32 %s420_s0, 4  ;;  %s8_s11 = int_to_ptr.vmem [resolvable:$true] %s7_s11 }
   0x2   :  { %s238_s12 = scalar_lea.vmem %s8_s11, 16  ;;  %p243_p1 = scmp.lt.s32.totalorder %s8_s11, %s8_s11 }
   0x3   :  { %p239_p0 = scmp.ne.s32.totalorder %s8_s11, %s238_s12  ;;  %p244_p2 = scmp.lt.s32.totalorder %s238_s12, %s238_s12 }
   0x5   :  { %p245_p3 = por %p244_p2, %p243_p1 }
   0x7   :  { %p246_p4 = pnand %p245_p3, %p239_p0 }
   0x9   :  { %249 = shalt.err (!%p246_p4)  }
   0xa   :  { %s314_s13 = smov [#allocation3]  }
   0xb   :  { %10 = dma.vmem_to_smem %s8_s11, 16, %s314_s13, [#allocation2] }
   0xc   :  { %292 = dma.done.wait [#allocation2], 16 }
   0xd   :  { %293 = vsyncadd [#allocation2], 4294967280 }
   0xe   :  { %12 = sfence }
   0xf   :  { %13 = vsyncpa [#allocation5], 0 }
  0x10   :  { %15 = vsyncpa [#allocation5 + $0x1], 0  ;;  %s334_s14 = smov 0   ;;  %s336_s15 = smov 0  }
  0x11   :  { %s338_s0 = smov 0   ;;  %s340_s16 = smov 0  }
  0x12 LB: > { %s355_s17 = sadd.s32 4294967295, %s312_s16   ;;  %s191_s18 = sadd.s32 4294967294, %s312_s16   ;;  %s312_s16 = sphi %s340_s16, %s428_s16   ;;  %s308_s0 = sphi %s338_s0, %s427_s0   ;;  %s304_s15 = sphi %s336_s15, %s426_s15   ;;  %s300_s14 = sphi %s334_s14, %s425_s14  }
  0x13   : > { %s359_s19 = sadd.s32 1, %s312_s16   ;;  %s56_s20 = sadd.s32 1, %s308_s0 }
  0x14   : > { %s53_s21 = ssub.s32 %s312_s16, %s359_s19  ;;  %p66_p5 = scmp.ne.s32.totalorder %s308_s0, %s304_s15 }
  0x15   : > { %p54_p6 = scmp.eq.s32.totalorder %s53_s21, 0  ;;  %p67_p7 = scmp.eq.s32.totalorder %s355_s17, 31 }
  0x16   : > { %p72_p8 = scmp.ne.s32.totalorder %s304_s15, %s300_s14  ;;  %p73_p9 = scmp.eq.s32.totalorder %s191_s18, 31 }
  0x17   : > { %s370_s22 = scalar_select %p54_p6, %s308_s0, %s56_s20  }
  0x18   : > { %p372_p10 = por %p67_p7, %p66_p5  ;;  %p376_p11 = por %p73_p9, %p72_p8 }
  0x19   : > { %p194_p12 = scmp.ge.s32.totalorder %s312_s16, 1  ;;  %p99_p13 = scmp.lt.s32.totalorder %s312_s16, 33 }
  0x1b   : > { %p100_p0 = pnand %p194_p12, %p99_p13 }
  0x1c   : > { %s117_s25 = sld [smem:[#allocation3 + %s355_s17]] (!%p100_p0)  ;;  %s115_s26 = sand.u32 (!%p100_p0), 1, %s304_s15  }
  0x1d   : > { %103 = sbr.rel (%p100_p0) target bundleno = 54 (0x36), region = 24  ;;  %s116_s27 = scalar_lea.vmem (!%p100_p0), [#allocation4], %s115_s26 }
  0x1e   : > { %s139_s28 = sshll.u32 (!%p100_p0), %s116_s27, 4  ;;  %s195_s29 = sshll.u32 (!%p100_p0), %s355_s17, 4  ;;  %s140_s28 = int_to_ptr.vmem [resolvable:$true] %s139_s28 }
  0x1f   : > { %s137_s7 = scalar_lea.hbm (!%p100_p0), %s422_s2, %s195_s29  ;;  %s127_s8 = scalar_lea.sflag (!%p100_p0), [#allocation5], %s115_s26 }
  0x20   : > { %s250_s9 = scalar_lea.vmem (!%p100_p0), %s140_s28, 16  ;;  %s315_s10 = smov (!%p100_p0), [#allocation4]  }
  0x21   : > { %p251_p2 = scmp.ne.s32.totalorder (!%p100_p0), %s140_s28, %s250_s9  ;;  %s254_s11 = sshll.u32 (!%p100_p0), %s315_s10, 4  ;;  %s255_s11 = int_to_ptr.vmem [resolvable:$false] %s254_s11 }
  0x22   : > { %p118_p1 = scmp.lt.s32.totalorder %s117_s25, 36  ;;  %vm124_vm0 = vcmask 253952   ;;  %s256_s12 = scalar_lea.vmem %s255_s11, 32 }
  0x23   : > { %p252_p3 = pnand %p251_p2, %p372_p10  ;;  %p257_p5 = scmp.lt.s32.totalorder %s140_s28, %s255_s11 }
  0x24   : > { %s430_s25 = smov (!%p118_p1, %s117_s25), 36  ;;  %p258_p6 = scmp.lt.s32.totalorder %s256_s12, %s250_s9 }
  0x25   : > { %s120_s4 = scalar_lea.vmem %s421_s1, %s430_s25  ;;  %p253_p4 = pneg %p252_p3 }
  0x26   : > { %v122_v0 = vld [vmem:[%s120_s4] sm:$0x1]  ;;  %p259_p7 = por %p258_p6, %p257_p5 }
  0x27   : > { %v123_v1 = vmul.f32 5.656854, %v122_v0 }
  0x28   : > { %p260_p8 = pnand %p259_p7, %p253_p4 }
  0x29   : > { %125 = vst.msk [vmem:[%s116_s27] sm:$0x1] %vm124_vm0, %v123_v1 }
  0x2a   : > { %263 = shalt.err (!%p260_p8)
}
  0x2b   : > { %s264_s13 = scalar_lea.hbm %s137_s7, 16  ;;  %s268_s20 = scalar_lea.hbm %s422_s2, 512 }
  0x2c   : > { %p265_p9 = scmp.ne.s32.totalorder %s137_s7, %s264_s13  ;;  %p269_p0 = scmp.lt.s32.totalorder %s137_s7, %s422_s2 }
  0x2d   : > { %p270_p1 = scmp.lt.s32.totalorder %s268_s20, %s264_s13 }
  0x2e   : > { %p266_p12 = pnand %p265_p9, %p372_p10 }
  0x2f   : > { %p271_p2 = por %p270_p1, %p269_p0 }
  0x30   : > { %p267_p13 = pneg %p266_p12 }
  0x32   : > { %p272_p3 = pnand %p271_p2, %p267_p13 }
  0x34   : > { %275 = shalt.err (!%p272_p3)
}
  0x35   : > { %198 = dma.vmem_to_hbm [thread:$0]  (%p372_p10), %s140_s28, 16, %s137_s7, %s127_s8  }
  0x36 PF: > { %p204_p4 = scmp.ge.s32.totalorder %s312_s16, 2  ;;  %s151_s26 = sand.u32 1, %s300_s14  }
  0x37   : > { %s152_s27 = scalar_lea.sflag [#allocation5], %s151_s26 }
  0x38   : > { %p201_p5 = pnand %p204_p4, %p376_p11 }
  0x3a   : > { %p202_p6 = pneg %p201_p5 }
  0x3c   : > { %295 = dma.done.wait (%p202_p6), %s152_s27, 16  }
  0x3d   : > { %297 = vsyncadd (%p202_p6), %s152_s27, 4294967280  ;;  %p18_p7 = scmp.ge.s32.totalorder %s359_s19, 34   ;;  %s425_s14 = smov %s304_s15 }
  0x3e   : > { %s426_s15 = smov %s308_s0  ;;  %s427_s0 = smov %s370_s22 }
  0x3f   : > { %s428_s16 = smov %s359_s19  ;;  %20 = sbr.rel (!%p18_p7) target bundleno = 18 (0x12), region = 59 }
  0x44   :  { %156 = vsyncpa [#allocation5], 1 }
  0x45   :  { %158 = vsyncpa [#allocation5 + $0x1], 1 }

</bundles_post_ra>
